<compile_context>
chip_gen: v7x
topology: tpu7x:2x2x1
jax: 0.10.0
libtpu: 0.0.40
codegen_flags: <defaults>
</compile_context>

<pallas_src>
import functools

import jax
import jax.numpy as jnp
from jax.experimental import pallas as pl
from jax.experimental.pallas import tpu as pltpu


def surrogate_kernel(xT_ref, uT_ref, w1xT_ref, w1uT_ref, b1_ref, w2T_ref, b2_ref,
                     out_ref, *, residual: bool):
    xT = xT_ref[...]                                               # (S, bb)

    # Layer 1 (feature-major): h^T = W1x^T @ x^T + W1u^T @ u^T  -> (H, bb)
    h = jnp.dot(w1xT_ref[...], xT, preferred_element_type=jnp.float32)
    h = h + jnp.dot(w1uT_ref[...], uT_ref[...], preferred_element_type=jnp.float32)
    h = jnp.maximum(h + b1_ref[...].astype(jnp.float32), 0.0)     # bias + ReLU (f32)

    # Layer 2: y^T = W2^T @ h^T  -> (S, bb), lane-dense output block.
    y = jnp.dot(w2T_ref[...], h.astype(w2T_ref.dtype),
                preferred_element_type=jnp.float32)
    y = y + b2_ref[...].astype(jnp.float32)
    if residual:
        y = y + xT.astype(jnp.float32)                             # residual
    out_ref[...] = y.astype(out_ref.dtype)


def _pick_block_b(B: int, S: int, C: int, H: int, itemsize: int) -> int:
    """VMEM-aware batch-tile pick; >=2 tiles for large B (v7x megacore)."""
    # f32 hidden (block_b, H) + double-buffered (S+C)-row input and S-row output tiles.
    per_row = H * 4 + 2 * (S + C) * itemsize + 2 * S * itemsize
    vmem_cap = max(128, ((16 << 20) // max(per_row, 1)) // 128 * 128)
    target = min(512, vmem_cap)
    if B <= target:
        return B                       # one full-extent block (legal for any B)
    half = -(-B // 2)                  # cdiv(B, 2): at least two lane-dense blocks
    half = -(-half // 128) * 128       # round up to lane width
    return min(target, half)


def surrogate_dynamic_model(x, u, params, *, residual=True, block_b=None,
                            use_kernel=None, min_kernel_batch=1024):
    """next_state = MLP(cat([x, u], -1)) + x, computed feature-major in Pallas."""
    B, S = x.shape
    Bu, C = u.shape
    assert Bu == B
    w1, b1, w2, b2 = params["w1"], params["b1"], params["w2"], params["b2"]
    H = w1.shape[1]
    assert w1.shape[0] == S + C and w2.shape == (H, S)
    assert b1.shape == (H,) and b2.shape == (S,)

    # Tiny problems: fixed pallas_call + DMA latency dominates -> let XLA fuse.
    if use_kernel is None:
        use_kernel = B >= min_kernel_batch
    if not use_kernel:
        xu = jnp.concatenate([x, u], axis=-1)
        y = jnp.maximum(xu @ w1 + b1, 0.0) @ w2 + b2
        return y + x if residual else y

    if block_b is None:
        block_b = _pick_block_b(B, S, C, H, jnp.dtype(x.dtype).itemsize)
    grid = (pl.cdiv(B, block_b),)

    # Feature-major operands (weight transposes are tiny; x/u transposes are
    # pure layout plumbing that disappears if the caller keeps state (S, B)).
    xT = x.T            # (S, B)
    uT = u.T            # (C, B)
    w1xT = w1[:S].T     # (H, S)
    w1uT = w1[S:].T     # (H, C)
    w2T = w2.T          # (S, H)
    b1c = b1.reshape(H, 1)
    b2c = b2.reshape(S, 1)

    isz = lambda a: jnp.dtype(a.dtype).itemsize
    cost = pl.CostEstimate(
        flops=2 * B * (S + C) * H + 2 * B * H * S,
        transcendentals=0,
        bytes_accessed=(x.size * isz(x) + u.size * isz(u)
                        + w1.size * isz(w1) + w2.size * isz(w2)
                        + b1.size * isz(b1) + b2.size * isz(b2)
                        + B * S * isz(x)))

    kernel = functools.partial(surrogate_kernel, residual=residual)

    outT = pl.pallas_call(
        kernel,
        out_shape=jax.ShapeDtypeStruct((S, B), x.dtype),
        grid=grid,
        in_specs=[
            pl.BlockSpec((S, block_b), lambda i: (0, i)),   # x^T tile (lane-dense)
            pl.BlockSpec((C, block_b), lambda i: (0, i)),   # u^T tile
            pl.BlockSpec((H, S), lambda i: (0, 0)),         # W1x^T
            pl.BlockSpec((H, C), lambda i: (0, 0)),         # W1u^T
            pl.BlockSpec((H, 1), lambda i: (0, 0)),         # b1 (lane-broadcast)
            pl.BlockSpec((S, H), lambda i: (0, 0)),         # W2^T
            pl.BlockSpec((S, 1), lambda i: (0, 0)),         # b2
        ],
        out_specs=pl.BlockSpec((S, block_b), lambda i: (0, i)),
        compiler_params=pltpu.CompilerParams(
            dimension_semantics=(("parallel",) if grid[0] > 1 else ("arbitrary",))),
        cost_estimate=cost,
    )(xT, uT, w1xT, w1uT, b1c, w2T, b2c)

    return outT.T                                           # back to (B, S)


def init_params(key, state_dim, ctrl_dim, hidden_dim, dtype=jnp.float32):
    """Deterministic synthetic init (PyTorch nn.Linear-style uniform bounds)."""
    k1, k2, k3, k4 = jax.random.split(key, 4)
    in1 = state_dim + ctrl_dim
    bound1 = 1.0 / jnp.sqrt(in1)
    bound2 = 1.0 / jnp.sqrt(hidden_dim)
    return {
        "w1": jax.random.uniform(k1, (in1, hidden_dim), dtype, -bound1, bound1),
        "b1": jax.random.uniform(k2, (hidden_dim,), dtype, -bound1, bound1),
        "w2": jax.random.uniform(k3, (hidden_dim, state_dim), dtype, -bound2, bound2),
        "b2": jax.random.uniform(k4, (state_dim,), dtype, -bound2, bound2),
    }


def reference(x, u, params):
    """Plain-JAX reference of SurrogateDynamicModel.forward (residual=True)."""
    xu = jnp.concatenate([x, u], axis=-1)
    h = jnp.maximum(xu @ params["w1"] + params["b1"], 0.0)
    return h @ params["w2"] + params["b2"] + x


if __name__ == "__main__":
    STATE_DIM, CTRL_DIM, HIDDEN = 4, 2, 32
    key = jax.random.PRNGKey(0)
    kx, ku, kp = jax.random.split(key, 3)
    params = init_params(kp, STATE_DIM, CTRL_DIM, HIDDEN)

    # 1) Small single-block sanity check (force the kernel path).
    B = 16
    x = jax.random.normal(kx, (B, STATE_DIM), jnp.float32)
    u = jax.random.normal(ku, (B, CTRL_DIM), jnp.float32)
    out = jax.block_until_ready(surrogate_dynamic_model(x, u, params, use_kernel=True))
    ref = reference(x, u, params)
    assert out.shape == (B, STATE_DIM)
    assert jnp.allclose(out, ref, atol=1e-5, rtol=1e-5), "small-batch mismatch"

    # 2) Multi-tile lane-dense path: 2 batch tiles of 256 lanes, "parallel" grid.
    B2 = 512
    kx2, ku2 = jax.random.split(jax.random.PRNGKey(1))
    x2 = jax.random.normal(kx2, (B2, STATE_DIM), jnp.float32)
    u2 = jax.random.normal(ku2, (B2, CTRL_DIM), jnp.float32)
    out2 = jax.block_until_ready(
        surrogate_dynamic_model(x2, u2, params, use_kernel=True, block_b=256))
    ref2 = reference(x2, u2, params)
    assert out2.shape == (B2, STATE_DIM)
    assert jnp.allclose(out2, ref2, atol=1e-5, rtol=1e-5), "multi-block mismatch"

    print("KERNEL_OK")
</pallas_src>

<mosaic_0001>
module attributes {stable_mosaic.version = 11 : i64} {
  func.func @surrogate_kernel(%arg0: i32, %arg1: memref<4x16xf32, #tpu.memory_space<vmem>>, %arg2: memref<2x16xf32, #tpu.memory_space<vmem>>, %arg3: memref<32x4xf32, #tpu.memory_space<vmem>>, %arg4: memref<32x2xf32, #tpu.memory_space<vmem>>, %arg5: memref<32x1xf32, #tpu.memory_space<vmem>>, %arg6: memref<4x32xf32, #tpu.memory_space<vmem>>, %arg7: memref<4x1xf32, #tpu.memory_space<vmem>>, %arg8: memref<4x16xf32, #tpu.memory_space<vmem>>) attributes {dimension_semantics = [#tpu.dimension_semantics<arbitrary>], iteration_bounds = array<i64: 1>, scalar_prefetch = 0 : i64, scratch_operands = 0 : i64, tpu.core_type = #tpu.core_type<tc>, window_params = [{transform_indices = @transform_0, window_bounds = array<i64: 4, 16>}, {transform_indices = @transform_1, window_bounds = array<i64: 2, 16>}, {pipeline_mode = #tpu.pipeline_mode<synchronous>, transform_indices = @transform_2, window_bounds = array<i64: 32, 4>}, {pipeline_mode = #tpu.pipeline_mode<synchronous>, transform_indices = @transform_3, window_bounds = array<i64: 32, 2>}, {pipeline_mode = #tpu.pipeline_mode<synchronous>, transform_indices = @transform_4, window_bounds = array<i64: 32, 1>}, {pipeline_mode = #tpu.pipeline_mode<synchronous>, transform_indices = @transform_5, window_bounds = array<i64: 4, 32>}, {pipeline_mode = #tpu.pipeline_mode<synchronous>, transform_indices = @transform_6, window_bounds = array<i64: 4, 1>}, {transform_indices = @transform_7, window_bounds = array<i64: 4, 16>}]} {
    %c0 = arith.constant 0 : index
    %c0_0 = arith.constant 0 : index
    %0 = vector.load %arg1[%c0, %c0_0] : memref<4x16xf32, #tpu.memory_space<vmem>>, vector<4x16xf32>
    %c0_1 = arith.constant 0 : index
    %c0_2 = arith.constant 0 : index
    %1 = vector.load %arg3[%c0_1, %c0_2] : memref<32x4xf32, #tpu.memory_space<vmem>>, vector<32x4xf32>
    %cst = arith.constant dense<0.000000e+00> : vector<32x16xf32>
    %2 = tpu.matmul %1, %0, %cst {dimension_numbers = #tpu.dot_dimension_numbers<[1], [0], [0], [1], [0, 0, 1, 1], [], []>} : vector<32x4xf32>, vector<4x16xf32>, vector<32x16xf32> -> vector<32x16xf32>
    %c0_3 = arith.constant 0 : index
    %c0_4 = arith.constant 0 : index
    %3 = vector.load %arg4[%c0_3, %c0_4] : memref<32x2xf32, #tpu.memory_space<vmem>>, vector<32x2xf32>
    %c0_5 = arith.constant 0 : index
    %c0_6 = arith.constant 0 : index
    %4 = vector.load %arg2[%c0_5, %c0_6] : memref<2x16xf32, #tpu.memory_space<vmem>>, vector<2x16xf32>
    %cst_7 = arith.constant dense<0.000000e+00> : vector<32x16xf32>
    %5 = tpu.matmul %3, %4, %cst_7 {dimension_numbers = #tpu.dot_dimension_numbers<[1], [0], [0], [1], [0, 0, 1, 1], [], []>} : vector<32x2xf32>, vector<2x16xf32>, vector<32x16xf32> -> vector<32x16xf32>
    %6 = arith.addf %2, %5 : vector<32x16xf32>
    %c0_8 = arith.constant 0 : index
    %c0_9 = arith.constant 0 : index
    %7 = vector.load %arg5[%c0_8, %c0_9] : memref<32x1xf32, #tpu.memory_space<vmem>>, vector<32x1xf32>
    %8 = vector.broadcast %7 : vector<32x1xf32> to vector<32x16xf32>
    %9 = arith.addf %6, %8 : vector<32x16xf32>
    %cst_10 = arith.constant 0.000000e+00 : f32
    %10 = vector.broadcast %cst_10 : f32 to vector<32x16xf32>
    %11 = arith.maximumf %9, %10 : vector<32x16xf32>
    %c0_11 = arith.constant 0 : index
    %c0_12 = arith.constant 0 : index
    %12 = vector.load %arg6[%c0_11, %c0_12] : memref<4x32xf32, #tpu.memory_space<vmem>>, vector<4x32xf32>
    %cst_13 = arith.constant dense<0.000000e+00> : vector<4x16xf32>
    %13 = tpu.matmul %12, %11, %cst_13 {dimension_numbers = #tpu.dot_dimension_numbers<[1], [0], [0], [1], [0, 0, 1, 1], [], []>} : vector<4x32xf32>, vector<32x16xf32>, vector<4x16xf32> -> vector<4x16xf32>
    %c0_14 = arith.constant 0 : index
    %c0_15 = arith.constant 0 : index
    %14 = vector.load %arg7[%c0_14, %c0_15] : memref<4x1xf32, #tpu.memory_space<vmem>>, vector<4x1xf32>
    %15 = vector.broadcast %14 : vector<4x1xf32> to vector<4x16xf32>
    %16 = arith.addf %13, %15 : vector<4x16xf32>
    %17 = arith.addf %16, %0 : vector<4x16xf32>
    %c0_16 = arith.constant 0 : index
    %c0_17 = arith.constant 0 : index
    %18 = vector.load %arg8[%c0_16, %c0_17] : memref<4x16xf32, #tpu.memory_space<vmem>>, vector<4x16xf32>
    tpu.vector_store %arg8[%c0_16, %c0_17], %17 {strides = array<i32>} : memref<4x16xf32, #tpu.memory_space<vmem>>, vector<4x16xf32>,
    return
  }
  func.func @transform_0(%arg0: i32) -> (i32, i32) {
    %c0_i32 = arith.constant 0 : i32
    %c0_i32_0 = arith.constant 0 : i32
    return %c0_i32, %arg0 : i32, i32
  }
  func.func @transform_1(%arg0: i32) -> (i32, i32) {
    %c0_i32 = arith.constant 0 : i32
    %c0_i32_0 = arith.constant 0 : i32
    return %c0_i32, %arg0 : i32, i32
  }
  func.func @transform_2(%arg0: i32) -> (i32, i32) {
    %c0_i32 = arith.constant 0 : i32
    %c0_i32_0 = arith.constant 0 : i32
    %c0_i32_1 = arith.constant 0 : i32
    return %c0_i32, %c0_i32_0 : i32, i32
  }
  func.func @transform_3(%arg0: i32) -> (i32, i32) {
    %c0_i32 = arith.constant 0 : i32
    %c0_i32_0 = arith.constant 0 : i32
    %c0_i32_1 = arith.constant 0 : i32
    return %c0_i32, %c0_i32_0 : i32, i32
  }
  func.func @transform_4(%arg0: i32) -> (i32, i32) {
    %c0_i32 = arith.constant 0 : i32
    %c0_i32_0 = arith.constant 0 : i32
    %c0_i32_1 = arith.constant 0 : i32
    return %c0_i32, %c0_i32_0 : i32, i32
  }
  func.func @transform_5(%arg0: i32) -> (i32, i32) {
    %c0_i32 = arith.constant 0 : i32
    %c0_i32_0 = arith.constant 0 : i32
    %c0_i32_1 = arith.constant 0 : i32
    return %c0_i32, %c0_i32_0 : i32, i32
  }
  func.func @transform_6(%arg0: i32) -> (i32, i32) {
    %c0_i32 = arith.constant 0 : i32
    %c0_i32_0 = arith.constant 0 : i32
    %c0_i32_1 = arith.constant 0 : i32
    return %c0_i32, %c0_i32_0 : i32, i32
  }
  func.func @transform_7(%arg0: i32) -> (i32, i32) {
    %c0_i32 = arith.constant 0 : i32
    %c0_i32_0 = arith.constant 0 : i32
    return %c0_i32, %arg0 : i32, i32
  }
}

</mosaic_0001>

<bundles_post_ra>
// kernel: tpu_custom_call.1
= control target key start
LH: loop header
LB: loop body
LE: loop exit
PB: predicated region body
PF: predicated region fallthrough
CT: control target
= control target key end

     0   :  { %vm50_vm0 = vcmask 1041408   ;;  %vm152_vm1 = vcmask 1043456   ;;  %vm37_vm2 = vcmask 15360   ;;  %vm139_vm3 = vcmask 31744   ;;  %s583_s0 = inlined_call_operand.vmem [shape: f32[4,16], index: 0, kind: input, shape index: {}]   ;;  %s584_s1 = inlined_call_operand.vmem [shape: f32[2,16], index: 1, kind: input, shape index: {}]   ;;  %s585_s2 = inlined_call_operand.vmem [shape: f32[32,4], index: 2, kind: input, shape index: {}]   ;;  %s586_s3 = inlined_call_operand.vmem [shape: f32[32,2], index: 3, kind: input, shape index: {}]   ;;  %s587_s4 = inlined_call_operand.vmem [shape: f32[32,1], index: 4, kind: input, shape index: {}]   ;;  %s588_s5 = inlined_call_operand.vmem [shape: f32[4,32], index: 5, kind: input, shape index: {}]   ;;  %s589_s6 = inlined_call_operand.vmem [shape: f32[4,1], index: 6, kind: input, shape index: {}]   ;;  %s590_s7 = inlined_call_operand.hbm [shape: f32[4,16], index: 7, kind: output, shape index: {}]  }
   0x1   :  { %v36_v0 = vld [vmem:[%s584_s1] sm:$0x3]  ;;  %v33_v4 = vld [vmem:[%s586_s3 + $0x8] sm:$0xff]  ;;  %v34_v6 = vld [vmem:[%s586_s3 + $0x10] sm:$0xff] }
   0x2   :  { %v516_v1 = vld [vmem:[%s583_s0] sm:$0xf]  ;;  %397 = vmatprep.subr.msk.mxu1 %vm50_vm0, %v36_v0  ;;  %v29_v5 = vld [vmem:[%s585_s2 + $0x8] sm:$0xff]  ;;  %v30_v7 = vld [vmem:[%s585_s2 + $0x10] sm:$0xff] }
   0x3   :  { %405 = vmatprep.subr.msk.mxu0 %vm152_vm1, %v516_v1  ;;  %v32_v2 = vld [vmem:[%s586_s3] sm:$0xff]  ;;  %398 = vmatpush3.msk.msra.mxu1 %vm50_vm0, %v36_v0  ;;  %v243_v9 = vld [vmem:[%s587_s4 + $0x10] sm:$0xff]  ;;  %v35_v10 = vld [vmem:[%s586_s3 + $0x18] sm:$0xff] }
   0x4   :  { %v28_v3 = vld [vmem:[%s585_s2] sm:$0xff]  ;;  %399 = vmatprep.mubr.msk.f32.mxu1 %vm37_vm2, %v32_v2  ;;  %406 = vmatpush3.msk.msra.mxu0 %vm152_vm1, %v516_v1  ;;  %v31_v11 = vld [vmem:[%s585_s2 + $0x18] sm:$0xff] }
   0x5   :  { %407 = vmatprep.mubr.msk.f32.mxu0 %vm139_vm3, %v28_v3  ;;  %400 = vmatmul.mubr.msk.f32.vlgmr.msra.gmra.mrb[0].mxu1 %vm37_vm2, %v33_v4  ;;  %v241_v8 = vld [vmem:[%s587_s4] sm:$0xff] }
   0x6   :  { %408 = vmatmul.mubr.msk.f32.vlgmr.msra.gmra.mrb[0].mxu0 %vm139_vm3, %v29_v5  ;;  %402 = vmatprep.mubr.msk.f32.mxu1 %vm37_vm2, %v34_v6 }
   0x7   :  { %410 = vmatprep.mubr.msk.f32.mxu0 %vm139_vm3, %v30_v7 }
   0x8   :  { %12 = vsyncpa [#allocation3], 0  ;;  %v465_v12 = vmov 0   ;;  %v242_v13 = vld [vmem:[%s587_s4 + $0x8] sm:$0xff]  ;;  %v244_v14 = vld [vmem:[%s587_s4 + $0x18] sm:$0xff]  ;;  %v466_v16 = vmov 0.0|0.0  }
   0x9   :  { %439 = vset.pattern.permute.xlu0 %v465_v12  ;;  %440 = vset.pattern.permute.xlu1 %v465_v12  ;;  %v274_v15 = vld [vmem:[%s589_s6] sm:$0xf]  ;;  %vm467_vm4 = vmmov 0   ;;  %v468_v17 = vmov 0.0   ;;  %vm280_vm5 = vcmask 261120   ;;  %s469_s27 = smov [#allocation2]  }
   0xa   :  { %247 = vperm.xlu0 %439, %v241_v8   ;;  %257 = vperm.xlu1 %440, %v243_v9   ;;  %v273_v44 = vld [vmem:[%s588_s5] sm:$0xf]  ;;  %s363_s28 = sshll.u32 %s469_s27, 4  ;;  %vm355_vm6 = vcmask 125952   ;;  %s364_s28 = int_to_ptr.vmem [resolvable:$true] %s363_s28 }
   0xb   :  { %403 = vmatmul.mubr.msk.f32.gmra.mrb[2].mxu1 %vm37_vm2, %v35_v10  ;;  %411 = vmatmul.mubr.msk.f32.gmra.mrb[2].mxu0 %vm139_vm3, %v31_v11  ;;  %s441_s29 = scalar_lea.vmem %s364_s28, 64  ;;  %p446_p1 = scmp.lt.s32.totalorder %s364_s28, %s364_s28 }
   0xc   :  { %424 = vmatprep.subr.bf16.mxu1 %v466_v16  ;;  %421 = vmatprep.mubr.msk.f32.mxu1 %vm467_vm4, %v468_v17  ;;  %p442_p0 = scmp.ne.s32.totalorder %s364_s28, %s441_s29  ;;  %p447_p2 = scmp.lt.s32.totalorder %s441_s29, %s441_s29 }
   0xe   :  { %252 = vperm.xlu0 %439, %v242_v13   ;;  %262 = vperm.xlu1 %440, %v244_v14   ;;  %p448_p3 = por %p447_p2, %p446_p1 }
  0x10   :  { %p449_p4 = pnand %p448_p3, %p442_p0 }
  0x12   :  { %277 = vperm.xlu0 %439, %v274_v15  }
  0x89   :  { %v248_v18 = vpop.permute.xlu0 %247  ;;  %v258_v19 = vpop.permute.xlu1 %257 }
  0x8d   :  { %v253_v25 = vpop.permute.xlu0 %252  ;;  %v263_v36 = vpop.permute.xlu1 %262 }
  0x91   :  { %v278_v45 = vpop.permute.xlu0 %277 }
  0xd8   :  { %v401_v20 = vpop.f32.mrb[0].mxu1 }
  0xd9   :  { %v409_v21 = vpop.f32.mrb[0].mxu0  ;;  %v120_v23 = vpop.f32.mrb[1].mxu1 }
  0xda   :  { %v228_v22 = vadd.f32 %v409_v21, %v401_v20  ;;  %v222_v24 = vpop.f32.mrb[1].mxu0 }
  0xdb   :  { %v223_v26 = vadd.f32 %v222_v24, %v120_v23 }
  0xdc   :  { %v266_v27 = vadd.f32 %v253_v25, %v228_v22 }
  0xdd   :  { %v265_v28 = vadd.f32 %v248_v18, %v223_v26 }
  0xde   :  { %v404_v29 = vpop.f32.mrb[2].mxu1  ;;  %v412_v30 = vpop.f32.mrb[2].mxu0  ;;  %v270_v31 = vmax.f32 %v266_v27, 0.0 }
  0xdf   :  { %v238_v32 = vadd.f32 %v412_v30, %v404_v29  ;;  %v130_v33 = vpop.f32.mrb[3].mxu1  ;;  %v232_v34 = vpop.f32.mrb[3].mxu0  ;;  %v269_v35 = vmax.f32 %v265_v28, 0.0 }
  0xe0   :  { %v233_v37 = vadd.f32 %v232_v34, %v130_v33 }
  0xe1   :  { %v268_v38 = vadd.f32 %v263_v36, %v238_v32  ;;  %v425_v39 = vpack.c.bf16 %v270_v31, %v269_v35 }
  0xe2   :  { %v267_v40 = vadd.f32 %v258_v19, %v233_v37 }
  0xe3   :  { %v272_v41 = vmax.f32 %v268_v38, 0.0  ;;  %426 = vmatpush3.bf16.msra.mxu1 %v425_v39 }
  0xe4   :  { %v271_v42 = vmax.f32 %v267_v40, 0.0  ;;  %427 = vmatprep.subr.bf16.mxu1 %v466_v16 }
  0xe6   :  { %v428_v43 = vpack.c.bf16 %v272_v41, %v271_v42 }
  0xe8   :  { %429 = vmatpush3.bf16.msra.mxu1 %v428_v43 }
  0xeb   :  { %422 = vmatmul.mubr.msk.f32.vlgmr.msra.gmra.mrb[4].mxu1 %vm280_vm5, %v273_v44 }
 0x1be   :  { %v350_v46 = vpop.f32.mrb[4].mxu1 }
 0x1bf   :  { %v351_v47 = vadd.f32 %v350_v46, %v278_v45  ;;  %v423_v48 = vpop.f32.mrb[5].mxu1 }
 0x1c1   :  { %v354_v49 = vadd.f32 %v351_v47, %v516_v1 }
 0x1c3   :  { %356 = vst.msk [vmem:[#allocation2] sm:$0xf] %vm355_vm6, %v354_v49 }
 0x1c4   :  { %452 = shalt.err (!%p449_p4)
}
 0x1c5   :  { %s453_s8 = scalar_lea.hbm %s590_s7, 64 }
 0x1c6   :  { %p454_p5 = scmp.ne.s32.totalorder %s590_s7, %s453_s8  ;;  %p457_p6 = scmp.lt.u32.totalorder %s453_s8, %s590_s7 }
 0x1c8   :  { %p459_p7 = pnand %p457_p6, %p454_p5 }
 0x1ca   :  { %462 = shalt.err (!%p459_p7)
}
 0x1cb   :  { %366 = dma.vmem_to_hbm [thread:$0]  %s364_s28, 64, %s590_s7, [#allocation3]  }
 0x1cc   :  { %463 = dma.done.wait [#allocation3], 64  }
 0x1cd   :  { %464 = vsyncadd [#allocation3], 4294967232 }
 0x1ce   :  { %370 = vsyncpa [#allocation3], 1 }

</bundles_post_ra>
